<compile_context>
chip_gen: v7x
topology: tpu7x:2x2x1
jax: 0.10.0
libtpu: 0.0.40
codegen_flags: <defaults>
</compile_context>

<pallas_src>
import functools

import jax
import jax.numpy as jnp
from jax.experimental import pallas as pl
from jax.experimental.pallas import tpu as pltpu

LANE = 128
SUBLANE = 8


def linear_qnet_kernel(x_ref, w1_ref, b1_ref, w2_ref, b2_ref, o_ref):
    # First linear + ReLU (MXU matmul, f32 accumulate; elementwise in f32).
    h = jnp.dot(x_ref[...], w1_ref[...], preferred_element_type=jnp.float32)
    h = h + b1_ref[...]                      # (TB, H_p) + (1, H_p) broadcast
    h = jnp.maximum(h, 0.0)                  # ReLU on VPU
    # Second linear (cast back to weight dtype for the MXU, accumulate f32).
    y = jnp.dot(h.astype(w2_ref.dtype), w2_ref[...],
                preferred_element_type=jnp.float32)
    y = y + b2_ref[...]                      # (TB, O_p) + (1, O_p) broadcast
    o_ref[...] = y.astype(o_ref.dtype)       # lane-dense store (O_p % 128 == 0)


def _round_up(n, m):
    return ((n + m - 1) // m) * m


def _pad2d(a, rows, cols):
    r, c = a.shape
    if r == rows and c == cols:
        return a
    return jnp.pad(a, ((0, rows - r), (0, cols - c)))


def prepare_params(w1, b1, w2, b2):
    """Pad weights/biases once (reused across every forward call).

    w1: (I, H), b1: (H,), w2: (H, O), b2: (O,)  ->
    (I, H_p), (1, H_p), (H_p, O_p), (1, O_p)  with H_p/O_p lane multiples.
    Zero padding is exact: padded b1 cols stay 0 through ReLU, padded W2 rows
    contribute 0, padded output cols are sliced off in the wrapper.
    """
    I, H = w1.shape
    H2, O = w2.shape
    assert H == H2 and b1.shape == (H,) and b2.shape == (O,)
    H_p = _round_up(H, LANE)
    O_p = _round_up(O, LANE)
    w1p = _pad2d(w1, I, H_p)                    # K (=I) left unpadded: MXU pads K
    b1p = _pad2d(b1.reshape(1, H), 1, H_p)
    w2p = _pad2d(w2, H_p, O_p)
    b2p = _pad2d(b2.reshape(1, O), 1, O_p)
    return w1p, b1p, w2p, b2p


@functools.partial(jax.jit, static_argnames=("out_features", "tile_b"))
def linear_qnet_forward(x, w1p, b1p, w2p, b2p, *, out_features, tile_b=2048):
    """Fused MLP forward.  x: (B, I); padded params from prepare_params()."""
    B, I = x.shape
    I2, H_p = w1p.shape
    H_p2, O_p = w2p.shape
    assert I == I2 and H_p == H_p2
    assert b1p.shape == (1, H_p) and b2p.shape == (1, O_p)
    O = out_features

    B8 = _round_up(B, SUBLANE)

    if B8 <= tile_b:
        # Gridless single-tile path: no grid prologue/epilogue, no double
        # buffering, whole arrays VMEM-resident.  Preferred on v5e/v6e.
        xp = x if B8 == B else _pad2d(x, B8, I)
        vmem_spec = pl.BlockSpec(memory_space=pltpu.MemorySpace.VMEM)
        out_p = pl.pallas_call(
            linear_qnet_kernel,
            out_shape=jax.ShapeDtypeStruct((B8, O_p), x.dtype),
            in_specs=[vmem_spec] * 5,
            out_specs=vmem_spec,
        )(xp, w1p, b1p, w2p, b2p)
    else:
        # Batch-streaming path: x/out tiled along batch, weights VMEM-resident
        # (constant block index => no re-DMA across batch tiles).
        n_tiles = -(-B // tile_b)
        n_tiles = _round_up(n_tiles, 2)          # even tile count: v7x 2-TC balance
        TB = _round_up(-(-B // n_tiles), SUBLANE)  # minimal batch padding per tile
        B_p = n_tiles * TB
        xp = _pad2d(x, B_p, I)                   # batch rows only; I stays unpadded
        out_p = pl.pallas_call(
            linear_qnet_kernel,
            out_shape=jax.ShapeDtypeStruct((B_p, O_p), x.dtype),
            grid=(n_tiles,),
            in_specs=[
                pl.BlockSpec((TB, I), lambda i: (i, 0)),     # streamed activations
                pl.BlockSpec((I, H_p), lambda i: (0, 0)),    # resident weights
                pl.BlockSpec((1, H_p), lambda i: (0, 0)),
                pl.BlockSpec((H_p, O_p), lambda i: (0, 0)),
                pl.BlockSpec((1, O_p), lambda i: (0, 0)),
            ],
            out_specs=pl.BlockSpec((TB, O_p), lambda i: (i, 0)),
            compiler_params=pltpu.CompilerParams(
                dimension_semantics=("parallel",)),
        )(xp, w1p, b1p, w2p, b2p)

    return out_p[:B, :O]


def init_linear_params(key, in_features, out_features, dtype=jnp.float32):
    """PyTorch nn.Linear default init: U(-1/sqrt(in), 1/sqrt(in))."""
    k_w, k_b = jax.random.split(key)
    bound = 1.0 / jnp.sqrt(jnp.float32(in_features))
    # Stored as (in, out) — transpose of PyTorch's (out, in) — so kernel does x @ W.
    w = jax.random.uniform(k_w, (in_features, out_features), dtype,
                           minval=-bound, maxval=bound)
    b = jax.random.uniform(k_b, (out_features,), dtype,
                           minval=-bound, maxval=bound)
    return w, b


# TODO(synk): LinearQNet.save() (torch.save checkpointing) is host-side I/O, not a kernel op.

if __name__ == "__main__":
    # Classic LinearQNet shapes (snake RL agent): 11 -> 256 -> 3.
    input_size, hidden_size, output_size = 11, 256, 3

    key = jax.random.PRNGKey(0)
    k_x, k_l1, k_l2 = jax.random.split(key, 3)

    w1, b1 = init_linear_params(k_l1, input_size, hidden_size)
    w2, b2 = init_linear_params(k_l2, hidden_size, output_size)
    params = prepare_params(w1, b1, w2, b2)   # padded once, reused every call

    def ref_fwd(xx):
        return jnp.maximum(xx @ w1 + b1, 0.0) @ w2 + b2

    # 1) Small batch (typical inference) -> gridless single-tile fast path.
    x_small = jax.random.normal(k_x, (8, input_size), jnp.float32)
    out_small = jax.block_until_ready(
        linear_qnet_forward(x_small, *params, out_features=output_size))
    assert out_small.shape == (8, output_size)
    assert jnp.allclose(out_small, ref_fwd(x_small), atol=1e-5, rtol=1e-5)

    # 2) Non-multiple-of-8 batch -> exercises minimal batch padding (to 8 rows).
    x_odd = x_small[:3]
    out_odd = jax.block_until_ready(
        linear_qnet_forward(x_odd, *params, out_features=output_size))
    assert out_odd.shape == (3, output_size)
    assert jnp.allclose(out_odd, ref_fwd(x_odd), atol=1e-5, rtol=1e-5)

    # 3) Force the batch-tiled grid path (small tile_b so the test stays tiny):
    #    B=40, tile_b=16 -> 4 tiles (even for v7x), TB=16, weights VMEM-resident.
    x_grid = jax.random.normal(k_x, (40, input_size), jnp.float32)
    out_grid = jax.block_until_ready(
        linear_qnet_forward(x_grid, *params, out_features=output_size, tile_b=16))
    assert out_grid.shape == (40, output_size)
    assert jnp.allclose(out_grid, ref_fwd(x_grid), atol=1e-5, rtol=1e-5)

    print("KERNEL_OK")
</pallas_src>

<mosaic_0001>
module attributes {stable_mosaic.version = 11 : i64} {
  func.func @linear_qnet_kernel(%arg0: memref<8x11xf32, #tpu.memory_space<vmem>>, %arg1: memref<11x256xf32, #tpu.memory_space<vmem>>, %arg2: memref<1x256xf32, #tpu.memory_space<vmem>>, %arg3: memref<256x128xf32, #tpu.memory_space<vmem>>, %arg4: memref<1x128xf32, #tpu.memory_space<vmem>>, %arg5: memref<8x128xf32, #tpu.memory_space<vmem>>) attributes {dimension_semantics = [], scalar_prefetch = 0 : i64, scratch_operands = 0 : i64, tpu.core_type = #tpu.core_type<tc>} {
    %c0 = arith.constant 0 : index
    %c0_0 = arith.constant 0 : index
    %0 = vector.load %arg0[%c0, %c0_0] : memref<8x11xf32, #tpu.memory_space<vmem>>, vector<8x11xf32>
    %c0_1 = arith.constant 0 : index
    %c0_2 = arith.constant 0 : index
    %1 = vector.load %arg1[%c0_1, %c0_2] : memref<11x256xf32, #tpu.memory_space<vmem>>, vector<11x256xf32>
    %cst = arith.constant dense<0.000000e+00> : vector<8x256xf32>
    %2 = tpu.matmul %0, %1, %cst {dimension_numbers = #tpu.dot_dimension_numbers<[1], [0], [0], [1], [0, 0, 1, 1], [], []>} : vector<8x11xf32>, vector<11x256xf32>, vector<8x256xf32> -> vector<8x256xf32>
    %c0_3 = arith.constant 0 : index
    %c0_4 = arith.constant 0 : index
    %3 = vector.load %arg2[%c0_3, %c0_4] : memref<1x256xf32, #tpu.memory_space<vmem>>, vector<1x256xf32>
    %4 = vector.broadcast %3 : vector<1x256xf32> to vector<8x256xf32>
    %5 = arith.addf %2, %4 : vector<8x256xf32>
    %cst_5 = arith.constant 0.000000e+00 : f32
    %6 = vector.broadcast %cst_5 : f32 to vector<8x256xf32>
    %7 = arith.maximumf %5, %6 : vector<8x256xf32>
    %c0_6 = arith.constant 0 : index
    %c0_7 = arith.constant 0 : index
    %8 = vector.load %arg3[%c0_6, %c0_7] : memref<256x128xf32, #tpu.memory_space<vmem>>, vector<256x128xf32>
    %cst_8 = arith.constant dense<0.000000e+00> : vector<8x128xf32>
    %9 = tpu.matmul %7, %8, %cst_8 {dimension_numbers = #tpu.dot_dimension_numbers<[1], [0], [0], [1], [0, 0, 1, 1], [], []>} : vector<8x256xf32>, vector<256x128xf32>, vector<8x128xf32> -> vector<8x128xf32>
    %c0_9 = arith.constant 0 : index
    %c0_10 = arith.constant 0 : index
    %10 = vector.load %arg4[%c0_9, %c0_10] : memref<1x128xf32, #tpu.memory_space<vmem>>, vector<1x128xf32>
    %11 = vector.broadcast %10 : vector<1x128xf32> to vector<8x128xf32>
    %12 = arith.addf %9, %11 : vector<8x128xf32>
    %c0_11 = arith.constant 0 : index
    %c0_12 = arith.constant 0 : index
    %13 = vector.load %arg5[%c0_11, %c0_12] : memref<8x128xf32, #tpu.memory_space<vmem>>, vector<8x128xf32>
    tpu.vector_store %arg5[%c0_11, %c0_12], %12 {strides = array<i32>} : memref<8x128xf32, #tpu.memory_space<vmem>>, vector<8x128xf32>,
    return
  }
}

</mosaic_0001>

<bundles_post_ra>
// kernel: linear_qnet_forward.1
= control target key start
LH: loop header
LB: loop body
LE: loop exit
PB: predicated region body
PF: predicated region fallthrough
CT: control target
= control target key end

     0   :  { %10 = vsyncpa [#allocation3], 0  ;;  %s524_s0 = inlined_call_operand.hbm [shape: f32[8,11], index: 0, kind: input, shape index: {}]   ;;  %s525_s1 = inlined_call_operand.hbm [shape: f32[11,256], index: 1, kind: input, shape index: {}]   ;;  %s526_s2 = inlined_call_operand.vmem [shape: f32[1,256], index: 2, kind: input, shape index: {}]   ;;  %s527_s3 = inlined_call_operand.hbm [shape: f32[256,128], index: 3, kind: input, shape index: {}]   ;;  %s528_s4 = inlined_call_operand.vmem [shape: f32[1,128], index: 4, kind: input, shape index: {}]   ;;  %s529_s5 = inlined_call_operand.vmem [shape: f32[8,128], index: 5, kind: output, shape index: {}]  }
   0x1   :  { %11 = vsyncpa [#allocation5], 0  ;;  %s432_s18 = smov [#allocation4]   ;;  %s362_s22 = scalar_lea.hbm %s525_s1, 512 }
   0x2   :  { %s27_s19 = sshll.u32 %s432_s18, 4  ;;  %p363_p0 = scmp.ne.s32.totalorder %s525_s1, %s362_s22  ;;  %s28_s19 = int_to_ptr.vmem [resolvable:$true] %s27_s19 }
   0x3   :  { %p366_p1 = scmp.lt.u32.totalorder %s362_s22, %s525_s1 }
   0x5   :  { %p368_p2 = pnand %p366_p1, %p363_p0 }
   0x7   :  { %371 = shalt.err (!%p368_p2)
}
   0x8   :  { %s372_s27 = scalar_lea.vmem %s28_s19, 512  ;;  %p377_p4 = scmp.lt.s32.totalorder %s28_s19, %s28_s19 }
   0x9   :  { %p373_p3 = scmp.ne.s32.totalorder %s28_s19, %s372_s27  ;;  %p378_p5 = scmp.lt.s32.totalorder %s372_s27, %s372_s27 }
   0xb   :  { %p379_p6 = por %p378_p5, %p377_p4 }
   0xd   :  { %p380_p7 = pnand %p379_p6, %p373_p3 }
   0xf   :  { %383 = shalt.err (!%p380_p7)
}
  0x10   :  { %s433_s28 = smov 256   ;;  %s434_s29 = smov 16  }
  0x11   :  { %33 = dma.hbm_to_vmem [thread:$0]  %s525_s1, 512, %s28_s19, [#allocation5], %s433_s28, %s433_s28, %s434_s29  }
  0x12   :  { %s435_s7 = smov [#allocation2]   ;;  %s436_s9 = smov [#allocation6]  }
  0x13   :  { %s18_s8 = sshll.u32 %s435_s7, 4  ;;  %s41_s10 = sshll.u32 %s436_s9, 4  ;;  %s19_s8 = int_to_ptr.vmem [resolvable:$true] %s18_s8  ;;  %s42_s10 = int_to_ptr.vmem [resolvable:$true] %s41_s10 }
  0x14   :  { %s384_s13 = scalar_lea.hbm %s524_s0, 128 }
  0x15   :  { %p385_p8 = scmp.ne.s32.totalorder %s524_s0, %s384_s13  ;;  %p388_p9 = scmp.lt.u32.totalorder %s384_s13, %s524_s0 }
  0x17   :  { %p390_p10 = pnand %p388_p9, %p385_p8 }
  0x19   :  { %393 = shalt.err (!%p390_p10)
}
  0x1a   :  { %s394_s1 = scalar_lea.vmem %s19_s8, 128  ;;  %p399_p12 = scmp.lt.s32.totalorder %s19_s8, %s19_s8 }
  0x1b   :  { %p395_p11 = scmp.ne.s32.totalorder %s19_s8, %s394_s1  ;;  %p400_p13 = scmp.lt.s32.totalorder %s394_s1, %s394_s1 }
  0x1d   :  { %p401_p0 = por %p400_p13, %p399_p12 }
  0x1f   :  { %p402_p1 = pnand %p401_p0, %p395_p11 }
  0x21   :  { %405 = shalt.err (!%p402_p1)
}
  0x22   :  { %21 = dma.hbm_to_vmem [thread:$0]  %s524_s0, 128, %s19_s8, [#allocation3]  }
  0x23   :  { %s406_s22 = scalar_lea.hbm %s527_s3, 4096 }
  0x24   :  { %p407_p2 = scmp.ne.s32.totalorder %s527_s3, %s406_s22  ;;  %p410_p3 = scmp.lt.u32.totalorder %s406_s22, %s527_s3 }
  0x26   :  { %p412_p4 = pnand %p410_p3, %p407_p2 }
  0x28   :  { %415 = shalt.err (!%p412_p4)
}
  0x29   :  { %s416_s27 = scalar_lea.vmem %s42_s10, 4096  ;;  %p421_p6 = scmp.lt.s32.totalorder %s42_s10, %s42_s10 }
  0x2a   :  { %p417_p5 = scmp.ne.s32.totalorder %s42_s10, %s416_s27  ;;  %p422_p7 = scmp.lt.s32.totalorder %s416_s27, %s416_s27 }
  0x2c   :  { %p423_p8 = por %p422_p7, %p421_p6 }
  0x2e   :  { %p424_p9 = pnand %p423_p8, %p417_p5 }
  0x30   :  { %427 = shalt.err (!%p424_p9)
}
  0x31   :  { %s437_s0 = smov 128   ;;  %s438_s28 = smov 8  }
  0x32   :  { %47 = dma.hbm_to_vmem [thread:$0]  %s527_s3, 4096, %s42_s10, [#allocation5], %s437_s0, %s437_s0, %s438_s28  }
  0x33   :  { %428 = dma.done.wait [#allocation3], 128  }
  0x34   :  { %429 = vsyncadd [#allocation3], 4294967168 }
  0x35   :  { %430 = dma.done.wait [#allocation5], 4608  }
  0x36   :  { %431 = vsyncadd [#allocation5], 4294962688  ;;  %v439_v0 = vmov 0.0   ;;  %vm80_vm0 = vcmask 1042432   ;;  %vm440_vm1 = vmmov 1   ;;  %v61_v2 = vld [vmem:[#allocation4 + $0x8] sm:$0xff]  ;;  %v66_v57 = vlaneseq }
  0x37   :  { %151 = vmatprep.mubr.f32.mxu0 %v439_v0  ;;  %vm507_vm2 = vmpackc.low %vm80_vm0, %vm440_vm1  ;;  %v63_v3 = vld [vmem:[#allocation4 + $0x18] sm:$0x7]  ;;  %v60_v4 = vld [vmem:[#allocation4] sm:$0xff]  ;;  %vm76_vm3 = vcmask 89088  }
  0x38   :  { %v315_v5 = vpack.c.bf16 %v63_v3, %v61_v2  ;;  %v62_v6 = vld [vmem:[#allocation4 + $0x10] sm:$0x7]  ;;  %v176_v7 = vld [vmem:[#allocation6 + $0x80] sm:$0xff]  ;;  %v59_v9 = vld [vmem:[#allocation2] sm:$0xff]  ;;  %v67_v58 = vshrl.u32 %v66_v57, 7 }
  0x39   :  { %v318_v8 = vpack.c.bf16 %v62_v6, %v60_v4  ;;  %v177_v10 = vld [vmem:[#allocation6 + $0x88] sm:$0xff]  ;;  %v160_v11 = vld [vmem:[#allocation6] sm:$0xff]  ;;  %v178_v15 = vld [vmem:[#allocation6 + $0x90] sm:$0xff] }
  0x3a   :  { %v161_v12 = vld [vmem:[#allocation6 + $0x8] sm:$0xff]  ;;  %317 = vmatprep.subr.msk.bf16.mxu0 %vm507_vm2, %v315_v5  ;;  %v321_v13 = vpack.c.bf16 %v177_v10, %v176_v7  ;;  %v179_v16 = vld [vmem:[#allocation6 + $0x98] sm:$0xff]  ;;  %v162_v17 = vld [vmem:[#allocation6 + $0x10] sm:$0xff]  ;;  %v68_v59 = vsub.s32 0, %v67_v58  ;;  %v72_v61 = vsub.s32 1, %v67_v58 }
  0x3b   :  { %v323_v14 = vpack.c.bf16 %v161_v12, %v160_v11  ;;  %320 = vmatpush1.bf16.msk.msra.mxu0 %vm507_vm2, %v318_v8  ;;  %v325_v18 = vpack.c.bf16 %v179_v16, %v178_v15  ;;  %v163_v19 = vld [vmem:[#allocation6 + $0x18] sm:$0xff]  ;;  %v180_v20 = vld [vmem:[#allocation6 + $0xa0] sm:$0xff]  ;;  %v181_v21 = vld [vmem:[#allocation6 + $0xa8] sm:$0xff] }
  0x3c   :  { %322 = vmatprep.subr.bf16.mxu1 %v321_v13  ;;  %v327_v22 = vpack.c.bf16 %v163_v19, %v162_v17  ;;  %v329_v23 = vpack.c.bf16 %v181_v21, %v180_v20  ;;  %v164_v24 = vld [vmem:[#allocation6 + $0x20] sm:$0xff]  ;;  %v165_v25 = vld [vmem:[#allocation6 + $0x28] sm:$0xff]  ;;  %v182_v26 = vld [vmem:[#allocation6 + $0xb0] sm:$0xff] }
  0x3d   :  { %324 = vmatpush3.bf16.msra.mxu1 %v323_v14  ;;  %v183_v27 = vld [vmem:[#allocation6 + $0xb8] sm:$0xff]  ;;  %v331_v28 = vpack.c.bf16 %v165_v25, %v164_v24  ;;  %v166_v30 = vld [vmem:[#allocation6 + $0x30] sm:$0xff]  ;;  %v184_v32 = vld [vmem:[#allocation6 + $0xc0] sm:$0xff] }
  0x3e   :  { %278 = vmatmul.mubr.msk.f32.vlgmr.msra.gmra.mrb[0].mxu0 %vm76_vm3, %v59_v9  ;;  %326 = vmatprep.subr.bf16.mxu1 %v325_v18  ;;  %v333_v29 = vpack.c.bf16 %v183_v27, %v182_v26  ;;  %v167_v31 = vld [vmem:[#allocation6 + $0x38] sm:$0xff]  ;;  %v185_v33 = vld [vmem:[#allocation6 + $0xc8] sm:$0xff]  ;;  %v168_v36 = vld [vmem:[#allocation6 + $0x40] sm:$0xff] }
  0x3f   :  { %v335_v34 = vpack.c.bf16 %v167_v31, %v166_v30  ;;  %v337_v35 = vpack.c.bf16 %v185_v33, %v184_v32  ;;  %v169_v37 = vld [vmem:[#allocation6 + $0x48] sm:$0xff]  ;;  %v186_v38 = vld [vmem:[#allocation6 + $0xd0] sm:$0xff]  ;;  %v187_v39 = vld [vmem:[#allocation6 + $0xd8] sm:$0xff] }
  0x40   :  { %v339_v40 = vpack.c.bf16 %v169_v37, %v168_v36  ;;  %v341_v41 = vpack.c.bf16 %v187_v39, %v186_v38  ;;  %v170_v42 = vld [vmem:[#allocation6 + $0x50] sm:$0xff]  ;;  %v171_v43 = vld [vmem:[#allocation6 + $0x58] sm:$0xff]  ;;  %v188_v44 = vld [vmem:[#allocation6 + $0xe0] sm:$0xff] }
  0x41   :  { %328 = vmatpush3.bf16.msra.mxu1 %v327_v22  ;;  %v189_v45 = vld [vmem:[#allocation6 + $0xe8] sm:$0xff]  ;;  %v343_v46 = vpack.c.bf16 %v171_v43, %v170_v42  ;;  %v172_v48 = vld [vmem:[#allocation6 + $0x60] sm:$0xff]  ;;  %v190_v51 = vld [vmem:[#allocation6 + $0xf0] sm:$0xff] }
  0x42   :  { %330 = vmatprep.subr.bf16.mxu1 %v329_v23  ;;  %v345_v47 = vpack.c.bf16 %v189_v45, %v188_v44  ;;  %v173_v49 = vld [vmem:[#allocation6 + $0x68] sm:$0xff]  ;;  %v191_v52 = vld [vmem:[#allocation6 + $0xf8] sm:$0xff]  ;;  %v174_v54 = vld [vmem:[#allocation6 + $0x70] sm:$0xff] }
  0x43   :  { %v347_v50 = vpack.c.bf16 %v173_v49, %v172_v48  ;;  %v349_v53 = vpack.c.bf16 %v191_v52, %v190_v51  ;;  %v175_v55 = vld [vmem:[#allocation6 + $0x78] sm:$0xff] }
  0x44   :  { %v351_v56 = vpack.c.bf16 %v175_v55, %v174_v54  ;;  %v64_v60 = vld [vmem:[%s526_s2] sm:$0x3] }
  0x45   :  { %332 = vmatpush3.bf16.msra.mxu1 %v331_v28  ;;  %v69_v62 = vrot.slane %v64_v60, %v68_v59  ;;  %v73_v63 = vrot.slane %v64_v60, %v72_v61  ;;  %v279_v7 = vld [vmem:[%s528_s4] ss:$0 sm:$0xff] }
  0x46   :  { %334 = vmatprep.subr.bf16.mxu1 %v333_v29 }
  0x49   :  { %336 = vmatpush3.bf16.msra.mxu1 %v335_v34 }
  0x4a   :  { %338 = vmatprep.subr.bf16.mxu1 %v337_v35 }
  0x4d   :  { %340 = vmatpush3.bf16.msra.mxu1 %v339_v40 }
  0x4e   :  { %342 = vmatprep.subr.bf16.mxu1 %v341_v41 }
  0x51   :  { %344 = vmatpush3.bf16.msra.mxu1 %v343_v46 }
  0x52   :  { %346 = vmatprep.subr.bf16.mxu1 %v345_v47 }
  0x55   :  { %348 = vmatpush3.bf16.msra.mxu1 %v347_v50 }
  0x56   :  { %350 = vmatprep.subr.bf16.mxu1 %v349_v53 }
  0x59   :  { %352 = vmatpush3.bf16.msra.mxu1 %v351_v56 }
 0x111   :  { %v153_v0 = vpop.f32.mrb[0].mxu0 }
 0x112   :  { %v154_v1 = vadd.f32 %v153_v0, %v69_v62  ;;  %v155_v2 = vpop.f32.mrb[1].mxu0 }
 0x113   :  { %v156_v3 = vadd.f32 %v155_v2, %v73_v63 }
 0x114   :  { %v158_v5 = vmax.f32 %v154_v1, 0.0 }
 0x115   :  { %v159_v4 = vmax.f32 %v156_v3, 0.0 }
 0x117   :  { %263 = vmatprep.mubr.f32.mxu1 %v159_v4 }
 0x118   :  { %264 = vmatmul.mubr.f32.vlgmr.msra.gmra.mrb[0].mxu1 %v158_v5 }
 0x1eb   :  { %v312_v6 = vpop.f32.mrb[0].mxu1 }
 0x1ec   :  { %v313_v8 = vpop.f32.mrb[1].mxu1 }
 0x1ed   :  { %v314_v9 = vadd.f32 %v313_v8, %v312_v6 }
 0x1ef   :  { %v266_v10 = vadd.f32 %v314_v9, %v279_v7 }
 0x1f1   :  { %269 = vst [vmem:[%s529_s5] sm:$0xff] %v266_v10 }
 0x1f2   :  { %274 = vsyncpa [#allocation3], 1 }
 0x1f3   :  { %275 = vsyncpa [#allocation5], 1 }

</bundles_post_ra>
